<compile_context>
chip_gen: v7x
topology: tpu7x:2x2x1
jax: 0.10.0
libtpu: 0.0.40
codegen_flags: <defaults>
</compile_context>

<pallas_src>
import functools

import jax
import jax.numpy as jnp
from jax.experimental import pallas as pl
from jax.experimental.pallas import tpu as pltpu

EPS = 1e-5
NEG_SLOPE = 0.2
LANE = 128
SUBLANE = 8
MAX_TM = 1024  # rows per M tile; amortizes ~0.35us/step, footprint is only a few MiB


def _cdiv(a, b):
    return -(-a // b)


def _round_up(x, m):
    return _cdiv(x, m) * m


def _fused_conv_bn_lrelu_kernel(p_ref, w_ref, g_ref, b_ref, o_ref, stats_ref, *, inv_m):
    # p_ref:    (TM, K)  bf16 im2col patches for this M tile
    # w_ref:    (K, Np)  bf16 flattened conv weight (resident across the grid)
    # g_ref:    (1, Np)  f32 BatchNorm gamma
    # b_ref:    (1, Np)  f32 BatchNorm beta
    # o_ref:    (TM, Np) f32 output tile (written only in phase 1)
    # stats_ref:(2, Np)  f32 persistent scratch: row 0 = sum(y), row 1 = sum(y*y)
    phase = pl.program_id(0)
    m = pl.program_id(1)

    @pl.when(jnp.logical_and(phase == 0, m == 0))
    def _init():
        stats_ref[...] = jnp.zeros_like(stats_ref)

    # MXU matmul: bf16 inputs, f32 accumulation.
    y = jnp.dot(p_ref[...], w_ref[...], preferred_element_type=jnp.float32)

    @pl.when(phase == 0)
    def _accumulate():
        stats_ref[0:1, :] += jnp.sum(y, axis=0, keepdims=True)
        stats_ref[1:2, :] += jnp.sum(y * y, axis=0, keepdims=True)

    @pl.when(phase == 1)
    def _normalize():
        # Biased batch statistics over the true M rows (f32 throughout).
        mean = stats_ref[0:1, :] * inv_m
        var = jnp.maximum(stats_ref[1:2, :] * inv_m - mean * mean, 0.0)
        # Fold BN + affine into one per-channel scale/shift (conv bias cancels).
        scale = g_ref[...] * jax.lax.rsqrt(var + EPS)
        shift = b_ref[...] - mean * scale
        z = y * scale + shift
        o_ref[...] = jnp.where(z >= 0, z, NEG_SLOPE * z).astype(o_ref.dtype)


def _im2col_k4s2p1(x):
    """NCHW -> (N*Ho*Wo, C*16) patch matrix; K ordered (c, kh, kw) to match
    PyTorch's weight.reshape(nout, nin*4*4)."""
    # TODO(synk): fold the 16-tap im2col into the kernel as a K-reduction grid
    # axis with a strided index_map into the padded NHWC input, so the 4x
    # expanded patch slab never hits HBM.
    N, C, H, W = x.shape
    Ho, Wo = H // 2, W // 2
    xp = jnp.pad(x, ((0, 0), (0, 0), (1, 1), (1, 1)))
    cols = []
    for kh in range(4):
        for kw in range(4):
            cols.append(xp[:, :, kh:kh + 2 * Ho:2, kw:kw + 2 * Wo:2])  # (N, C, Ho, Wo)
    patches = jnp.stack(cols, axis=2)                                  # (N, C, 16, Ho, Wo)
    patches = patches.transpose(0, 3, 4, 1, 2).reshape(N * Ho * Wo, C * 16)
    return patches, Ho, Wo


def dcgan_conv_forward(x, weight, bias, gamma, beta):
    """x: (N, nin, H, W) NCHW, weight: (nout, nin, 4, 4). Returns NCHW output.

    `bias` is accepted for nn.Conv2d parity but unused: train-mode BatchNorm's
    mean subtraction over (N, H, W) cancels it exactly.
    """
    del bias
    N, C, H, W = x.shape
    nout = weight.shape[0]

    patches, Ho, Wo = _im2col_k4s2p1(x)
    M, K = patches.shape                       # K = C*16, always a multiple of 16

    # Lane-dense channel dim and tiled M axis (minimal zero padding).
    Np = _round_up(nout, LANE)
    n_tiles = _cdiv(M, MAX_TM)
    TM = _round_up(_cdiv(M, n_tiles), SUBLANE)
    Mp = TM * n_tiles

    # bf16 MXU feeds; all post-matmul math stays f32 inside the kernel.
    patches_p = patches.astype(jnp.bfloat16)
    if Mp != M:
        patches_p = jnp.pad(patches_p, ((0, Mp - M), (0, 0)))

    w_mat = weight.reshape(nout, K).T.astype(jnp.bfloat16)           # (K, nout)
    w_mat = jnp.pad(w_mat, ((0, 0), (0, Np - nout)))
    g_row = jnp.pad(gamma.astype(jnp.float32).reshape(1, nout),
                    ((0, 0), (0, Np - nout)))
    b_row = jnp.pad(beta.astype(jnp.float32).reshape(1, nout),
                    ((0, 0), (0, Np - nout)))

    kernel = functools.partial(_fused_conv_bn_lrelu_kernel, inv_m=1.0 / float(M))

    out_flat = pl.pallas_call(
        kernel,
        out_shape=jax.ShapeDtypeStruct((Mp, Np), jnp.float32),
        grid_spec=pltpu.PrefetchScalarGridSpec(
            num_scalar_prefetch=0,
            grid=(2, n_tiles),                                   # (phase, m_tile)
            in_specs=[
                pl.BlockSpec((TM, K), lambda p, m: (m, 0)),      # patches tile
                pl.BlockSpec((K, Np), lambda p, m: (0, 0)),      # weight (resident)
                pl.BlockSpec((1, Np), lambda p, m: (0, 0)),      # gamma (resident)
                pl.BlockSpec((1, Np), lambda p, m: (0, 0)),      # beta  (resident)
            ],
            # Constant output block during phase 0 (no write-back of unwritten
            # data); one tile per step during phase 1.
            out_specs=pl.BlockSpec((TM, Np), lambda p, m: (p * m, 0)),
            scratch_shapes=[pltpu.VMEM((2, Np), jnp.float32)],
        ),
        compiler_params=pltpu.CompilerParams(
            # Both axes are sequential: phase 1 depends on phase 0's full-M
            # statistics and the scratch/output blocks are shared across M.
            # TODO(synk): megacore split of the M axis with per-core partial
            # BN sums combined before the normalize phase.
            dimension_semantics=("arbitrary", "arbitrary"),
            vmem_limit_bytes=32 * 1024 * 1024,
        ),
    )(patches_p, w_mat, g_row, b_row)

    out_flat = out_flat[:M, :nout]
    # TODO(synk): keep NHWC between stacked dcgan_conv layers; only transpose
    # to NCHW at model boundaries.
    return out_flat.reshape(N, Ho, Wo, nout).transpose(0, 3, 1, 2)


dcgan_conv_forward = jax.jit(dcgan_conv_forward)


if __name__ == "__main__":
    nin, nout = 4, 8
    N, H, W = 2, 16, 16

    key = jax.random.PRNGKey(0)
    kx, kw, kb = jax.random.split(key, 3)

    x = jax.random.normal(kx, (N, nin, H, W), dtype=jnp.float32)

    # Conv2d default init: U(-bound, bound), bound = 1/sqrt(fan_in)
    fan_in = nin * 4 * 4
    bound = 1.0 / (fan_in ** 0.5)
    weight = jax.random.uniform(kw, (nout, nin, 4, 4), jnp.float32, -bound, bound)
    bias = jax.random.uniform(kb, (nout,), jnp.float32, -bound, bound)

    # BatchNorm2d default init: gamma = 1, beta = 0
    gamma = jnp.ones((nout,), jnp.float32)
    beta = jnp.zeros((nout,), jnp.float32)

    out = dcgan_conv_forward(x, weight, bias, gamma, beta)
    jax.block_until_ready(out)
    assert out.shape == (N, nout, H // 2, W // 2), out.shape

    # Lightweight correctness check against a pure-JAX reference (bf16 MXU feed
    # with f32 accumulation -> loose tolerance).
    def _ref(x, weight, bias, gamma, beta):
        y = jax.lax.conv_general_dilated(
            x, weight, window_strides=(2, 2), padding=((1, 1), (1, 1)),
            dimension_numbers=("NCHW", "OIHW", "NCHW"))
        y = y + bias.reshape(1, -1, 1, 1)
        mean = jnp.mean(y, axis=(0, 2, 3), keepdims=True)
        var = jnp.mean((y - mean) ** 2, axis=(0, 2, 3), keepdims=True)
        z = (gamma.reshape(1, -1, 1, 1) * (y - mean) * jax.lax.rsqrt(var + EPS)
             + beta.reshape(1, -1, 1, 1))
        return jnp.where(z >= 0, z, NEG_SLOPE * z)

    ref = _ref(x, weight, bias, gamma, beta)
    err = float(jnp.max(jnp.abs(out - ref)))
    assert err < 5e-2, f"max abs err {err}"

    print("KERNEL_OK")
</pallas_src>

<mosaic_0001>
module attributes {stable_mosaic.version = 11 : i64} {
  func.func @_fused_conv_bn_lrelu_kernel(%arg0: i32, %arg1: i32, %arg2: memref<128x64xbf16, #tpu.memory_space<vmem>>, %arg3: memref<64x128xbf16, #tpu.memory_space<vmem>>, %arg4: memref<1x128xf32, #tpu.memory_space<vmem>>, %arg5: memref<1x128xf32, #tpu.memory_space<vmem>>, %arg6: memref<128x128xf32, #tpu.memory_space<vmem>>, %arg7: memref<2x128xf32, #tpu.memory_space<vmem>>) attributes {dimension_semantics = [#tpu.dimension_semantics<arbitrary>, #tpu.dimension_semantics<arbitrary>], iteration_bounds = array<i64: 2, 1>, scalar_prefetch = 0 : i64, scratch_operands = 1 : i64, tpu.core_type = #tpu.core_type<tc>, window_params = [{transform_indices = @transform_0, window_bounds = array<i64: 128, 64>}, {pipeline_mode = #tpu.pipeline_mode<synchronous>, transform_indices = @transform_1, window_bounds = array<i64: 64, 128>}, {pipeline_mode = #tpu.pipeline_mode<synchronous>, transform_indices = @transform_2, window_bounds = array<i64: 1, 128>}, {pipeline_mode = #tpu.pipeline_mode<synchronous>, transform_indices = @transform_3, window_bounds = array<i64: 1, 128>}, {transform_indices = @transform_4, window_bounds = array<i64: 128, 128>}]} {
    %c0_i32 = arith.constant 0 : i32
    %0 = arith.cmpi eq, %arg0, %c0_i32 : i32
    %c0_i32_0 = arith.constant 0 : i32
    %1 = arith.cmpi eq, %arg1, %c0_i32_0 : i32
    %2 = arith.andi %0, %1 : i1
    %3 = arith.extui %2 : i1 to i32
    %c0_i32_1 = arith.constant 0 : i32
    %4 = arith.cmpi ne, %3, %c0_i32_1 : i32
    scf.if %4 {
      %cst_8 = arith.constant 0.000000e+00 : f32
      %14 = vector.broadcast %cst_8 : f32 to vector<2x128xf32>
      %c0_9 = arith.constant 0 : index
      %c0_10 = arith.constant 0 : index
      %15 = vector.load %arg7[%c0_9, %c0_10] : memref<2x128xf32, #tpu.memory_space<vmem>>, vector<2x128xf32>
      tpu.vector_store %arg7[%c0_9, %c0_10], %14 {strides = array<i32>} : memref<2x128xf32, #tpu.memory_space<vmem>>, vector<2x128xf32>,
    } else {
    }
    %c0 = arith.constant 0 : index
    %c0_2 = arith.constant 0 : index
    %5 = vector.load %arg2[%c0, %c0_2] : memref<128x64xbf16, #tpu.memory_space<vmem>>, vector<128x64xbf16>
    %c0_3 = arith.constant 0 : index
    %c0_4 = arith.constant 0 : index
    %6 = vector.load %arg3[%c0_3, %c0_4] : memref<64x128xbf16, #tpu.memory_space<vmem>>, vector<64x128xbf16>
    %cst = arith.constant dense<0.000000e+00> : vector<128x128xf32>
    %7 = tpu.matmul %5, %6, %cst {dimension_numbers = #tpu.dot_dimension_numbers<[1], [0], [0], [1], [0, 0, 1, 1], [], []>} : vector<128x64xbf16>, vector<64x128xbf16>, vector<128x128xf32> -> vector<128x128xf32>
    %c0_i32_5 = arith.constant 0 : i32
    %8 = arith.cmpi eq, %arg0, %c0_i32_5 : i32
    %9 = arith.extui %8 : i1 to i32
    %c0_i32_6 = arith.constant 0 : i32
    %10 = arith.cmpi ne, %9, %c0_i32_6 : i32
    scf.if %10 {
      %c0_8 = arith.constant 0 : index
      %c0_9 = arith.constant 0 : index
      %14 = vector.load %arg7[%c0_8, %c0_9] : memref<2x128xf32, #tpu.memory_space<vmem>>, vector<1x128xf32>
      %cst_10 = arith.constant dense<0.000000e+00> : vector<128xf32>
      %15 = vector.multi_reduction <add>, %7, %cst_10 [0] : vector<128x128xf32> to vector<128xf32>
      %16 = vector.shape_cast %15 : vector<128xf32> to vector<1x128xf32>
      %17 = arith.addf %14, %16 : vector<1x128xf32>
      %c0_11 = arith.constant 0 : index
      %c0_12 = arith.constant 0 : index
      %18 = vector.load %arg7[%c0_11, %c0_12] : memref<2x128xf32, #tpu.memory_space<vmem>>, vector<1x128xf32>
      tpu.vector_store %arg7[%c0_11, %c0_12], %17 {strides = array<i32>} : memref<2x128xf32, #tpu.memory_space<vmem>>, vector<1x128xf32>,
      %c1 = arith.constant 1 : index
      %c0_13 = arith.constant 0 : index
      %19 = vector.load %arg7[%c1, %c0_13] : memref<2x128xf32, #tpu.memory_space<vmem>>, vector<1x128xf32>
      %20 = arith.mulf %7, %7 : vector<128x128xf32>
      %cst_14 = arith.constant dense<0.000000e+00> : vector<128xf32>
      %21 = vector.multi_reduction <add>, %20, %cst_14 [0] : vector<128x128xf32> to vector<128xf32>
      %22 = vector.shape_cast %21 : vector<128xf32> to vector<1x128xf32>
      %23 = arith.addf %19, %22 : vector<1x128xf32>
      %c1_15 = arith.constant 1 : index
      %c0_16 = arith.constant 0 : index
      %24 = vector.load %arg7[%c1_15, %c0_16] : memref<2x128xf32, #tpu.memory_space<vmem>>, vector<1x128xf32>
      tpu.vector_store %arg7[%c1_15, %c0_16], %23 {strides = array<i32>} : memref<2x128xf32, #tpu.memory_space<vmem>>, vector<1x128xf32>,
    } else {
    }
    %c1_i32 = arith.constant 1 : i32
    %11 = arith.cmpi eq, %arg0, %c1_i32 : i32
    %12 = arith.extui %11 : i1 to i32
    %c0_i32_7 = arith.constant 0 : i32
    %13 = arith.cmpi ne, %12, %c0_i32_7 : i32
    scf.if %13 {
      %c0_8 = arith.constant 0 : index
      %c0_9 = arith.constant 0 : index
      %14 = vector.load %arg7[%c0_8, %c0_9] : memref<2x128xf32, #tpu.memory_space<vmem>>, vector<1x128xf32>
      %cst_10 = arith.constant 7.812500e-03 : f32
      %15 = vector.broadcast %cst_10 : f32 to vector<1x128xf32>
      %16 = arith.mulf %14, %15 : vector<1x128xf32>
      %c1 = arith.constant 1 : index
      %c0_11 = arith.constant 0 : index
      %17 = vector.load %arg7[%c1, %c0_11] : memref<2x128xf32, #tpu.memory_space<vmem>>, vector<1x128xf32>
      %cst_12 = arith.constant 7.812500e-03 : f32
      %18 = vector.broadcast %cst_12 : f32 to vector<1x128xf32>
      %19 = arith.mulf %17, %18 : vector<1x128xf32>
      %20 = arith.mulf %16, %16 : vector<1x128xf32>
      %21 = arith.subf %19, %20 : vector<1x128xf32>
      %cst_13 = arith.constant 0.000000e+00 : f32
      %22 = vector.broadcast %cst_13 : f32 to vector<1x128xf32>
      %23 = arith.maximumf %21, %22 : vector<1x128xf32>
      %c0_14 = arith.constant 0 : index
      %c0_15 = arith.constant 0 : index
      %24 = vector.load %arg4[%c0_14, %c0_15] : memref<1x128xf32, #tpu.memory_space<vmem>>, vector<1x128xf32>
      %cst_16 = arith.constant 9.99999974E-6 : f32
      %25 = vector.broadcast %cst_16 : f32 to vector<1x128xf32>
      %26 = arith.addf %23, %25 : vector<1x128xf32>
      %27 = math.rsqrt %26 : vector<1x128xf32>
      %28 = arith.mulf %24, %27 : vector<1x128xf32>
      %c0_17 = arith.constant 0 : index
      %c0_18 = arith.constant 0 : index
      %29 = vector.load %arg5[%c0_17, %c0_18] : memref<1x128xf32, #tpu.memory_space<vmem>>, vector<1x128xf32>
      %30 = arith.mulf %16, %28 : vector<1x128xf32>
      %31 = arith.subf %29, %30 : vector<1x128xf32>
      %32 = vector.broadcast %28 : vector<1x128xf32> to vector<128x128xf32>
      %33 = arith.mulf %7, %32 : vector<128x128xf32>
      %34 = vector.broadcast %31 : vector<1x128xf32> to vector<128x128xf32>
      %35 = arith.addf %33, %34 : vector<128x128xf32>
      %cst_19 = arith.constant 0.000000e+00 : f32
      %36 = vector.broadcast %cst_19 : f32 to vector<128x128xf32>
      %37 = arith.cmpf oge, %35, %36 : vector<128x128xf32>
      %cst_20 = arith.constant 2.000000e-01 : f32
      %38 = vector.broadcast %cst_20 : f32 to vector<128x128xf32>
      %39 = arith.mulf %38, %35 : vector<128x128xf32>
      %40 = arith.select %37, %35, %39 : vector<128x128xi1>, vector<128x128xf32>
      %c0_21 = arith.constant 0 : index
      %c0_22 = arith.constant 0 : index
      %41 = vector.load %arg6[%c0_21, %c0_22] : memref<128x128xf32, #tpu.memory_space<vmem>>, vector<128x128xf32>
      tpu.vector_store %arg6[%c0_21, %c0_22], %40 {strides = array<i32>} : memref<128x128xf32, #tpu.memory_space<vmem>>, vector<128x128xf32>,
    } else {
    }
    return
  }
  func.func @transform_0(%arg0: i32, %arg1: i32) -> (i32, i32) {
    %c0_i32 = arith.constant 0 : i32
    %c0_i32_0 = arith.constant 0 : i32
    return %arg1, %c0_i32 : i32, i32
  }
  func.func @transform_1(%arg0: i32, %arg1: i32) -> (i32, i32) {
    %c0_i32 = arith.constant 0 : i32
    %c0_i32_0 = arith.constant 0 : i32
    %c0_i32_1 = arith.constant 0 : i32
    return %c0_i32, %c0_i32_0 : i32, i32
  }
  func.func @transform_2(%arg0: i32, %arg1: i32) -> (i32, i32) {
    %c0_i32 = arith.constant 0 : i32
    %c0_i32_0 = arith.constant 0 : i32
    %c0_i32_1 = arith.constant 0 : i32
    return %c0_i32, %c0_i32_0 : i32, i32
  }
  func.func @transform_3(%arg0: i32, %arg1: i32) -> (i32, i32) {
    %c0_i32 = arith.constant 0 : i32
    %c0_i32_0 = arith.constant 0 : i32
    %c0_i32_1 = arith.constant 0 : i32
    return %c0_i32, %c0_i32_0 : i32, i32
  }
  func.func @transform_4(%arg0: i32, %arg1: i32) -> (i32, i32) {
    %0 = arith.muli %arg0, %arg1 : i32
    %c0_i32 = arith.constant 0 : i32
    %c0_i32_0 = arith.constant 0 : i32
    return %0, %c0_i32 : i32, i32
  }
}

</mosaic_0001>

<bundles_post_ra>
// kernel: dcgan_conv_forward.1
= control target key start
LH: loop header
LB: loop body
LE: loop exit
PB: predicated region body
PF: predicated region fallthrough
CT: control target
= control target key end

     0   :  { %s866_s15 = smov 0   ;;  %s868_s16 = smov 0   ;;  %s1128_s0 = inlined_call_operand.vmem [shape: bf16[128,64], index: 0, kind: input, shape index: {}]   ;;  %s1129_s1 = inlined_call_operand.vmem [shape: bf16[64,128], index: 1, kind: input, shape index: {}]   ;;  %s1130_s2 = inlined_call_operand.vmem [shape: f32[1,128], index: 2, kind: input, shape index: {}]   ;;  %s1131_s3 = inlined_call_operand.vmem [shape: f32[1,128], index: 3, kind: input, shape index: {}]   ;;  %s1132_s4 = inlined_call_operand.vmem [shape: f32[128,128], index: 4, kind: output, shape index: {}]  }
   0x1   :  { %s870_s17 = smov 0  }
   0x2 LB: > { %s26_s18 = sadd.s32 1, %s834_s16  ;;  %p704_p0 = scmp.ge.s32.totalorder %s838_s17, 1  ;;  %s838_s17 = sphi %s870_s17, %s14_s17   ;;  %s834_s16 = sphi %s868_s16, %s1134_s16   ;;  %s830_s15 = sphi %s866_s15, %s1133_s15  }
   0x3   : > { %p28_p1 = scmp.ge.s32.totalorder %s26_s18, 2  ;;  %p177_p2 = scmp.lt.s32.totalorder %s838_s17, 3 }
   0x5   : > { %s1136_s18 = smov (%p28_p1, %s26_s18), 0  ;;  %p178_p3 = pnand %p704_p0, %p177_p2 }
   0x6   : > { %p219_p4 = scmp.eq.s32.totalorder (!%p178_p3), %s830_s15, 0 }
   0x7   : > { %181 = sbr.rel (%p178_p3) target bundleno = 355 (0x163), region = 36 }
   0xe   : > { %224 = sbr.rel (!%p219_p4) target bundleno = 21 (0x15), region = 40  ;;  %v840_v0 = vmov (%p219_p4), 0.0  }
   0xf   : > { %225 = vst [vmem:[#allocation2] sm:$0x3] (%p219_p4), %v840_v0 }
  0x15 PF: > { %v802_v1 = vld [vmem:[%s1129_s1] sm:$0xff]   ;;  %v803_v2 = vld [vmem:[%s1129_s1 + $0x8] sm:$0xff]   ;;  %v804_v3 = vld [vmem:[%s1129_s1 + $0x10] sm:$0xff]   ;;  %vm314_vm0 = vcmask 523264   ;;  %p726_p5 = scmp.ne.s32.totalorder %s830_s15, 0 }
  0x16   : > { %745 = vmatprep.subr.bf16.mxu0 %v802_v1  ;;  %769 = vmatprep.subr.bf16.mxu1 %v802_v1  ;;  %v806_v4 = vld [vmem:[%s1128_s0] sm:$0xff]   ;;  %v805_v6 = vld [vmem:[%s1129_s1 + $0x18] sm:$0xff]   ;;  %v808_v7 = vld [vmem:[%s1128_s0 + $0x8] sm:$0xff]  }
  0x17   : > { %746 = vmatpush3.bf16.msra.mxu0 %v802_v1  ;;  %773 = vmatpush3.bf16.msra.mxu1 %v802_v1  ;;  %v807_v5 = vld [vmem:[%s1128_s0 + $0x20] sm:$0xff]   ;;  %v809_v8 = vld [vmem:[%s1128_s0 + $0x28] sm:$0xff]   ;;  %v810_v9 = vld [vmem:[%s1128_s0 + $0x10] sm:$0xff]  }
  0x18   : > { %747 = vmatprep.subr.bf16.mxu0 %v803_v2  ;;  %770 = vmatprep.subr.bf16.mxu1 %v803_v2  ;;  %v811_v10 = vld [vmem:[%s1128_s0 + $0x30] sm:$0xff]   ;;  %v812_v11 = vld [vmem:[%s1128_s0 + $0x18] sm:$0xff]  }
  0x19   : > { %753 = vmatprep.mubr.msk.bf16.mxu0 %vm314_vm0, %v806_v4  ;;  %761 = vmatprep.mubr.msk.bf16.mxu1 %vm314_vm0, %v807_v5  ;;  %v813_v12 = vld [vmem:[%s1128_s0 + $0x38] sm:$0xff]  }
  0x1b   : > { %748 = vmatpush3.bf16.msra.mxu0 %v803_v2  ;;  %774 = vmatpush3.bf16.msra.mxu1 %v803_v2 }
  0x1c   : > { %749 = vmatprep.subr.bf16.mxu0 %v804_v3  ;;  %771 = vmatprep.subr.bf16.mxu1 %v804_v3 }
  0x1f   : > { %750 = vmatpush3.bf16.msra.mxu0 %v804_v3  ;;  %775 = vmatpush3.bf16.msra.mxu1 %v804_v3 }
  0x20   : > { %751 = vmatprep.subr.bf16.mxu0 %v805_v6  ;;  %772 = vmatprep.subr.bf16.mxu1 %v805_v6 }
  0x23   : > { %752 = vmatpush3.bf16.msra.mxu0 %v805_v6  ;;  %776 = vmatpush3.bf16.msra.mxu1 %v805_v6 }
  0x26   : > { %754 = vmatmul.mubr.msk.bf16.vlgmr.msra.gmra.mrb[0].mxu0 %vm314_vm0, %v808_v7  ;;  %762 = vmatmul.mubr.msk.bf16.vlgmr.msra.gmra.mrb[0].mxu1 %vm314_vm0, %v809_v8 }
  0x27   : > { %757 = vmatprep.mubr.msk.bf16.mxu0 %vm314_vm0, %v810_v9  ;;  %765 = vmatprep.mubr.msk.bf16.mxu1 %vm314_vm0, %v811_v10 }
  0x2e   : > { %758 = vmatmul.mubr.msk.bf16.gmra.mrb[4].mxu0 %vm314_vm0, %v812_v11  ;;  %766 = vmatmul.mubr.msk.bf16.gmra.mrb[4].mxu1 %vm314_vm0, %v813_v12 }
  0xf9   : > { %v931_v13 = vpop.f32.mrb[0].mxu0  ;;  %v933_v14 = vpop.f32.mrb[0].mxu1 }
  0xfa   : > { %v935_v15 = vpop.f32.mrb[1].mxu0  ;;  %v937_v16 = vpop.f32.mrb[1].mxu1  ;;  %v466_v33 = vmul.f32 (!%p726_p5), %v931_v13, %v931_v13  ;;  %v474_v56 = vmul.f32 (!%p726_p5), %v933_v14, %v933_v14 }
  0xfb   : > { %v939_v17 = vpop.f32.mrb[2].mxu0  ;;  %v941_v18 = vpop.f32.mrb[2].mxu1  ;;  %v464_v30 = vmul.f32 (!%p726_p5), %v935_v15, %v935_v15  ;;  %v472_v50 = vmul.f32 (!%p726_p5), %v937_v16, %v937_v16 }
  0xfc   : > { %v943_v19 = vpop.f32.mrb[3].mxu0  ;;  %v945_v20 = vpop.f32.mrb[3].mxu1  ;;  %v467_v35 = vmul.f32 (!%p726_p5), %v939_v17, %v939_v17  ;;  %v475_v59 = vmul.f32 (!%p726_p5), %v941_v18, %v941_v18 }
  0xfd   : > { %v440_v29 = vadd.f32 (!%p726_p5), %v943_v19, %v935_v15  ;;  %v465_v31 = vmul.f32 (!%p726_p5), %v943_v19, %v943_v19  ;;  %v473_v53 = vmul.f32 (!%p726_p5), %v945_v20, %v945_v20 }
  0xfe   : > { %438 = sbr.rel (%p726_p5) target bundleno = 300 (0x12c), region = 44 }
  0xff   : > { %v441_v32 = vadd.f32 (!%p726_p5), %v931_v13, %v440_v29  ;;  %v480_v36 = vadd.f32 (!%p726_p5), %v465_v31, %v464_v30 }
 0x101   : > { %v947_v21 = vpop.f32.mrb[4].mxu0  ;;  %v949_v22 = vpop.f32.mrb[4].mxu1  ;;  %v442_v34 = vadd.f32 (!%p726_p5), %v939_v17, %v441_v32  ;;  %v481_v39 = vadd.f32 (!%p726_p5), %v480_v36, %v466_v33 }
 0x102   : > { %v951_v23 = vpop.f32.mrb[5].mxu0  ;;  %v953_v24 = vpop.f32.mrb[5].mxu1  ;;  %v470_v44 = vmul.f32 (!%p726_p5), %v947_v21, %v947_v21  ;;  %v478_v4 = vmul.f32 (!%p726_p5), %v949_v22, %v949_v22 }
 0x103   : > { %v955_v25 = vpop.f32.mrb[6].mxu0  ;;  %v957_v26 = vpop.f32.mrb[6].mxu1  ;;  %v443_v37 = vadd.f32 (!%p726_p5), %v442_v34, %v951_v23  ;;  %v468_v38 = vmul.f32 (!%p726_p5), %v951_v23, %v951_v23  ;;  %v482_v42 = vadd.f32 (!%p726_p5), %v481_v39, %v467_v35  ;;  %v476_v62 = vmul.f32 (!%p726_p5), %v953_v24, %v953_v24  ;;  %v439_v35 = vld [vmem:[#allocation2] sm:$0x1] (!%p726_p5) }
 0x104   : > { %v959_v27 = vpop.f32.mrb[7].mxu0  ;;  %v961_v28 = vpop.f32.mrb[7].mxu1  ;;  %v471_v47 = vmul.f32 (!%p726_p5), %v955_v25, %v955_v25  ;;  %v479_v7 = vmul.f32 (!%p726_p5), %v957_v26, %v957_v26 }
 0x105   : > { %v444_v40 = vadd.f32 %v443_v37, %v959_v27  ;;  %v469_v41 = vmul.f32 %v959_v27, %v959_v27  ;;  %v483_v45 = vadd.f32 %v482_v42, %v468_v38  ;;  %v477_v1 = vmul.f32 %v961_v28, %v961_v28 }
 0x107   : > { %v445_v43 = vadd.f32 %v947_v21, %v444_v40  ;;  %v484_v48 = vadd.f32 %v483_v45, %v469_v41  ;;  %v463_v40 = vld [vmem:[#allocation2 + $0x1] sm:$0x1] }
 0x109   : > { %v446_v46 = vadd.f32 %v955_v25, %v445_v43  ;;  %v485_v51 = vadd.f32 %v484_v48, %v470_v44 }
 0x10b   : > { %v447_v49 = vadd.f32 %v446_v46, %v937_v16  ;;  %v486_v54 = vadd.f32 %v485_v51, %v471_v47 }
 0x10d   : > { %v448_v52 = vadd.f32 %v447_v49, %v945_v20  ;;  %v487_v57 = vadd.f32 %v486_v54, %v472_v50 }
 0x10f   : > { %v449_v55 = vadd.f32 %v933_v14, %v448_v52  ;;  %v488_v60 = vadd.f32 %v487_v57, %v473_v53 }
 0x111   : > { %v450_v58 = vadd.f32 %v941_v18, %v449_v55  ;;  %v489_v63 = vadd.f32 %v488_v60, %v474_v56 }
 0x113   : > { %v451_v61 = vadd.f32 %v450_v58, %v953_v24  ;;  %v490_v2 = vadd.f32 %v489_v63, %v475_v59 }
 0x115   : > { %v452_v0 = vadd.f32 %v451_v61, %v961_v28  ;;  %v491_v5 = vadd.f32 %v490_v2, %v476_v62 }
 0x117   : > { %v453_v3 = vadd.f32 %v949_v22, %v452_v0  ;;  %v492_v8 = vadd.f32 %v491_v5, %v477_v1 }
 0x119   : > { %v454_v6 = vadd.f32 %v957_v26, %v453_v3  ;;  %v493_v10 = vadd.f32 %v492_v8, %v478_v4 }
 0x11b   : > { %v455_v9 = vrot.slane %v454_v6, 4  ;;  %v494_v12 = vadd.f32 %v493_v10, %v479_v7 }
 0x11d   : > { %v456_v11 = vadd.f32 %v455_v9, %v454_v6  ;;  %v495_v30 = vrot.slane %v494_v12, 4 }
 0x11f   : > { %v457_v29 = vrot.slane %v456_v11, 2  ;;  %v496_v32 = vadd.f32 %v495_v30, %v494_v12 }
 0x121   : > { %v458_v31 = vadd.f32 %v457_v29, %v456_v11  ;;  %v497_v34 = vrot.slane %v496_v32, 2 }
 0x123   : > { %v459_v33 = vrot.slane %v458_v31, 1  ;;  %v498_v37 = vadd.f32 %v497_v34, %v496_v32 }
 0x125   : > { %v460_v36 = vadd.f32 %v459_v33, %v458_v31  ;;  %v499_v39 = vrot.slane %v498_v37, 1 }
 0x127   : > { %v461_v38 = vadd.f32 %v460_v36, %v439_v35  ;;  %v500_v41 = vadd.f32 %v499_v39, %v498_v37 }
 0x129   : > { %462 = vst [vmem:[#allocation2] sm:$0x1] %v461_v38  ;;  %v501_v42 = vadd.f32 %v500_v41, %v463_v40 }
 0x12b   : > { %502 = vst [vmem:[#allocation2 + $0x1] sm:$0x1] %v501_v42 }
 0x12c PF: > { %p727_p6 = scmp.ne.s32.totalorder %s830_s15, 1 }
 0x12d   : > { %v522_v51 = vlaneseq (!%p727_p6)  ;;  %v514_v53 = vld [vmem:[%s1130_s2] sm:$0x1] (!%p727_p6) }
 0x12e   : > { %506 = sbr.rel (%p727_p6) target bundleno = 355 (0x163), region = 48  ;;  %v518_v57 = vld [vmem:[%s1131_s3] sm:$0x1] (!%p727_p6) }
 0x12f   : > { %v523_v52 = vshrl.u32 (!%p727_p6), %v522_v51, 7 }
 0x130   : > { %v507_v43 = vld [vmem:[#allocation2] sm:$0x1] (!%p727_p6) }
 0x131   : > { %v508_v45 = vmul.f32 (!%p727_p6), 0.0078125, %v507_v43  ;;  %v524_v54 = vsub.s32 (!%p727_p6), 0, %v523_v52 }
 0x132   : > { %v509_v44 = vld [vmem:[#allocation2 + $0x1] sm:$0x1] (!%p727_p6) }
 0x133   : > { %v510_v46 = vmul.f32 (!%p727_p6), 0.0078125, %v509_v44  ;;  %v511_v47 = vmul.f32 (!%p727_p6), %v508_v45, %v508_v45 }
 0x135   : > { %v512_v48 = vsub.f32 %v510_v46, %v511_v47 }
 0x137   : > { %v513_v49 = vmax.f32 %v512_v48, 0.0 }
 0x139   : > { %v515_v50 = vadd.f32 1e-05, %v513_v49 }
 0x13b   : > { %814 = vrsqrt.f32 %v515_v50 }
 0x145   : > { %v815_v55 = vpop.eup %814 }
 0x146   : > { %v517_v56 = vmul.f32 %v815_v55, %v514_v53 }
 0x148   : > { %v519_v58 = vmul.f32 %v517_v56, %v508_v45  ;;  %v1019_v59 = vrot.slane %v517_v56, %v524_v54 }
 0x14a   : > { %v520_v60 = vsub.f32 %v518_v57, %v519_v58  ;;  %v527_v61 = vmul.f32 %v1019_v59, %v935_v15  ;;  %v528_v62 = vmul.f32 %v1019_v59, %v943_v19  ;;  %v529_v63 = vmul.f32 %v931_v13, %v1019_v59 }
 0x14b   : > { %v530_v0 = vmul.f32 %v939_v17, %v1019_v59  ;;  %v531_v1 = vmul.f32 %v1019_v59, %v951_v23  ;;  %v532_v2 = vmul.f32 %v1019_v59, %v959_v27  ;;  %v533_v3 = vmul.f32 %v947_v21, %v1019_v59 }
 0x14c   : > { %v1035_v4 = vrot.slane %v520_v60, %v524_v54  ;;  %v534_v15 = vmul.f32 %v955_v25, %v1019_v59  ;;  %v535_v13 = vmul.f32 %v1019_v59, %v937_v16  ;;  %v536_v17 = vmul.f32 %v1019_v59, %v945_v20 }
 0x14d   : > { %v537_v19 = vmul.f32 %v933_v14, %v1019_v59  ;;  %v538_v23 = vmul.f32 %v941_v18, %v1019_v59  ;;  %v539_v21 = vmul.f32 %v1019_v59, %v953_v24  ;;  %v540_v27 = vmul.f32 %v1019_v59, %v961_v28 }
 0x14e   : > { %v549_v25 = vadd.f32 %v1035_v4, %v527_v61  ;;  %v550_v5 = vadd.f32 %v1035_v4, %v528_v62  ;;  %v551_v16 = vadd.f32 %v1035_v4, %v529_v63  ;;  %v552_v20 = vadd.f32 %v1035_v4, %v530_v0 }
 0x14f   : > { %v553_v6 = vadd.f32 %v1035_v4, %v531_v1  ;;  %v554_v14 = vadd.f32 %v1035_v4, %v532_v2  ;;  %v555_v18 = vadd.f32 %v1035_v4, %v533_v3  ;;  %v556_v7 = vadd.f32 %v1035_v4, %v534_v15 }
 0x150   : > { %vm565_vm1 = vcmp.ge.f32.partialorder %v549_v25, 0.0  ;;  %v581_v24 = vmul.f32 0.2, %v549_v25  ;;  %vm566_vm2 = vcmp.ge.f32.partialorder %v550_v5, 0.0  ;;  %v582_v28 = vmul.f32 0.2, %v550_v5 }
 0x151   : > { %vm567_vm3 = vcmp.ge.f32.partialorder %v551_v16, 0.0  ;;  %v583_v8 = vmul.f32 0.2, %v551_v16  ;;  %vm568_vm4 = vcmp.ge.f32.partialorder %v552_v20, 0.0  ;;  %v584_v9 = vmul.f32 0.2, %v552_v20 }
 0x152   : > { %v597_v10 = vsel %vm565_vm1, %v549_v25, %v581_v24  ;;  %v598_v11 = vsel %vm566_vm2, %v550_v5, %v582_v28  ;;  %vm569_vm5 = vcmp.ge.f32.partialorder %v553_v6, 0.0  ;;  %v585_v12 = vmul.f32 0.2, %v553_v6 }
 0x153   : > { %613 = vst [vmem:[%s1132_s4] sm:$0xff] %v597_v10  ;;  %614 = vst [vmem:[%s1132_s4 + $0x8] sm:$0xff] %v598_v11  ;;  %v599_v29 = vsel %vm567_vm3, %v551_v16, %v583_v8  ;;  %v600_v30 = vsel %vm568_vm4, %v552_v20, %v584_v9  ;;  %vm570_vm6 = vcmp.ge.f32.partialorder %v554_v14, 0.0  ;;  %v586_v31 = vmul.f32 0.2, %v554_v14 }
 0x154   : > { %615 = vst [vmem:[%s1132_s4 + $0x10] sm:$0xff] %v599_v29  ;;  %616 = vst [vmem:[%s1132_s4 + $0x18] sm:$0xff] %v600_v30  ;;  %v601_v32 = vsel %vm569_vm5, %v553_v6, %v585_v12  ;;  %vm571_vm7 = vcmp.ge.f32.partialorder %v555_v18, 0.0  ;;  %v587_v33 = vmul.f32 0.2, %v555_v18  ;;  %vm572_vm8 = vcmp.ge.f32.partialorder %v556_v7, 0.0 }
 0x155   : > { %617 = vst [vmem:[%s1132_s4 + $0x20] sm:$0xff] %v601_v32  ;;  %v602_v34 = vsel %vm570_vm6, %v554_v14, %v586_v31  ;;  %v588_v35 = vmul.f32 0.2, %v556_v7  ;;  %v557_v36 = vadd.f32 %v1035_v4, %v535_v13  ;;  %v558_v37 = vadd.f32 %v1035_v4, %v536_v17 }
 0x156   : > { %618 = vst [vmem:[%s1132_s4 + $0x28] sm:$0xff] %v602_v34  ;;  %v603_v38 = vsel %vm571_vm7, %v555_v18, %v587_v33  ;;  %v559_v39 = vadd.f32 %v1035_v4, %v537_v19  ;;  %v560_v40 = vadd.f32 %v1035_v4, %v538_v23  ;;  %v561_v41 = vadd.f32 %v1035_v4, %v539_v21 }
 0x157   : > { %619 = vst [vmem:[%s1132_s4 + $0x30] sm:$0xff] %v603_v38  ;;  %v604_v42 = vsel %vm572_vm8, %v556_v7, %v588_v35  ;;  %vm573_vm9 = vcmp.ge.f32.partialorder %v557_v36, 0.0  ;;  %v589_v43 = vmul.f32 0.2, %v557_v36  ;;  %vm574_vm10 = vcmp.ge.f32.partialorder %v558_v37, 0.0 }
 0x158   : > { %620 = vst [vmem:[%s1132_s4 + $0x38] sm:$0xff] %v604_v42  ;;  %v590_v44 = vmul.f32 0.2, %v558_v37  ;;  %vm575_vm11 = vcmp.ge.f32.partialorder %v559_v39, 0.0  ;;  %v591_v45 = vmul.f32 0.2, %v559_v39  ;;  %v562_v51 = vadd.f32 %v1035_v4, %v540_v27 }
 0x159   : > { %vm576_vm12 = vcmp.ge.f32.partialorder %v560_v40, 0.0  ;;  %v605_v46 = vsel %vm573_vm9, %v557_v36, %v589_v43  ;;  %v592_v47 = vmul.f32 0.2, %v560_v40  ;;  %vm577_vm13 = vcmp.ge.f32.partialorder %v561_v41, 0.0 }
 0x15a   : > { %v593_v48 = vmul.f32 0.2, %v561_v41  ;;  %621 = vst [vmem:[%s1132_s4 + $0x40] sm:$0xff] %v605_v46  ;;  %v606_v49 = vsel %vm574_vm10, %v558_v37, %v590_v44  ;;  %v607_v50 = vsel %vm575_vm11, %v559_v39, %v591_v45  ;;  %v541_v52 = vmul.f32 %v949_v22, %v1019_v59 }
 0x15b   : > { %622 = vst [vmem:[%s1132_s4 + $0x48] sm:$0xff] %v606_v49  ;;  %623 = vst [vmem:[%s1132_s4 + $0x50] sm:$0xff] %v607_v50  ;;  %v608_v53 = vsel %vm576_vm12, %v560_v40, %v592_v47  ;;  %v542_v55 = vmul.f32 %v957_v26, %v1019_v59  ;;  %vm578_vm14 = vcmp.ge.f32.partialorder %v562_v51, 0.0  ;;  %v594_v22 = vmul.f32 0.2, %v562_v51 }
 0x15c   : > { %v609_v54 = vsel %vm577_vm13, %v561_v41, %v593_v48  ;;  %624 = vst [vmem:[%s1132_s4 + $0x58] sm:$0xff] %v608_v53  ;;  %v563_v56 = vadd.f32 %v1035_v4, %v541_v52 }
 0x15d   : > { %625 = vst [vmem:[%s1132_s4 + $0x60] sm:$0xff] %v609_v54  ;;  %v564_v57 = vadd.f32 %v1035_v4, %v542_v55  ;;  %v610_v58 = vsel %vm578_vm14, %v562_v51, %v594_v22 }
 0x15e   : > { %vm579_vm15 = vcmp.ge.f32.partialorder %v563_v56, 0.0  ;;  %v595_v60 = vmul.f32 0.2, %v563_v56  ;;  %626 = vst [vmem:[%s1132_s4 + $0x68] sm:$0xff] %v610_v58 }
 0x15f   : > { %vm580_vm0 = vcmp.ge.f32.partialorder %v564_v57, 0.0  ;;  %v596_v26 = vmul.f32 0.2, %v564_v57 }
 0x160   : > { %v611_v59 = vsel %vm579_vm15, %v563_v56, %v595_v60 }
 0x161   : > { %627 = vst [vmem:[%s1132_s4 + $0x70] sm:$0xff] %v611_v59  ;;  %v612_v61 = vsel %vm580_vm0, %v564_v57, %v596_v26 }
 0x162   : > { %628 = vst [vmem:[%s1132_s4 + $0x78] sm:$0xff] %v612_v61 }
 0x163 PF: > { %s14_s17 = sadd.s32 1, %s838_s17   ;;  %s1133_s15 = smov %s834_s16 }
 0x164   : > { %p11_p7 = scmp.ge.s32.totalorder %s14_s17, 4   ;;  %s1134_s16 = smov %s1136_s18 }
 0x166   :  { %13 = sbr.rel (!%p11_p7) target bundleno = 2 (0x2), region = 78 }

</bundles_post_ra>
